<compile_context>
chip_gen: v6e
topology: v6e:2x2x1
jax: 0.10.0
libtpu: 0.0.40
codegen_flags: <defaults>
</compile_context>

<pallas_src>
import functools

import jax
import jax.numpy as jnp
from jax.experimental import pallas as pl
from jax.experimental.pallas import tpu as pltpu


def _round_up(n: int, m: int) -> int:
    return ((n + m - 1) // m) * m


# ----------------------------------------------------------------------------
# Kernel
# ----------------------------------------------------------------------------
def _vae_kernel(x_ref, eps_ref,
                w_enc_ref, b_enc_ref,
                w_head_ref, b_head_ref,
                w_d1_ref, b_d1_ref,
                w_d2_ref, b_d2_ref,
                xrec_ref, head_ref,
                *, head_half, compute_dtype):
    def dot(a, w_ref):
        w = w_ref[...]
        if compute_dtype == jnp.float32:
            # bit-tight reference-check path only
            return jnp.dot(a, w, preferred_element_type=jnp.float32,
                           precision=jax.lax.Precision.HIGHEST)
        # perf path: weights already stored in bf16; only the (changing)
        # activation is cast per step. Accumulation stays f32 on the MXU.
        return jnp.dot(a.astype(w.dtype), w, preferred_element_type=jnp.float32)

    x = x_ref[...]
    eps = eps_ref[...]

    # ---- encoder q(z|x) ----
    h = jnp.maximum(dot(x, w_enc_ref) + b_enc_ref[...], 0.0)          # ReLU

    # fused [mu | logvar] head: one MXU pass, one lane-dense 2*head_half store.
    head = dot(h, w_head_ref) + b_head_ref[...]
    head_ref[...] = head

    mu = head[:, :head_half]
    logvar = head[:, head_half:]

    # ---- reparameterization trick (f32 elementwise / EUP exp) ----
    z = mu + eps * jnp.exp(0.5 * logvar)

    # ---- decoder p(x|z) ----
    hd = jnp.maximum(dot(z, w_d1_ref) + b_d1_ref[...], 0.0)           # ReLU
    logits = dot(hd, w_d2_ref) + b_d2_ref[...]
    xrec_ref[...] = jax.nn.sigmoid(logits)                            # bernoulli probs


# ----------------------------------------------------------------------------
# Parameter init / packing
# ----------------------------------------------------------------------------
def init_vae_params(key, input_dim, hidden_dim, latent_dim):
    """Deterministic init mimicking torch.nn.Linear default (uniform +/- 1/sqrt(fan_in))."""
    def linear(k, fan_in, fan_out):
        kw, kb = jax.random.split(k)
        bound = 1.0 / jnp.sqrt(fan_in)
        w = jax.random.uniform(kw, (fan_in, fan_out), jnp.float32, -bound, bound)
        b = jax.random.uniform(kb, (1, fan_out), jnp.float32, -bound, bound)
        return w, b

    keys = jax.random.split(key, 5)
    w_enc, b_enc = linear(keys[0], input_dim, hidden_dim)
    w_mu, b_mu = linear(keys[1], hidden_dim, latent_dim)
    w_lv, b_lv = linear(keys[2], hidden_dim, latent_dim)
    w_d1, b_d1 = linear(keys[3], latent_dim, hidden_dim)
    w_d2, b_d2 = linear(keys[4], hidden_dim, input_dim)
    return (w_enc, b_enc, w_mu, b_mu, w_lv, b_lv, w_d1, b_d1, w_d2, b_d2)


def pack_vae_params(params, latent_dim, *, compute_dtype=jnp.bfloat16):
    """One-time host-side layout transform.

    * fuses the mu/logvar heads (lanes [0, head_half) = mu, [head_half, 2h) = logvar)
      with head_half = round_up(latent_dim, 64) so the head store is lane-dense,
    * zero-pads hidden_dim and the decoder output width to multiples of 128,
    * zero-pads decoder rows for the padded latent lanes (exact no-ops),
    * stores weights in `compute_dtype` (bf16 for the perf path); biases stay f32.
    """
    (w_enc, b_enc, w_mu, b_mu, w_lv, b_lv, w_d1, b_d1, w_d2, b_d2) = params
    input_dim, hidden_dim = w_enc.shape
    hidden_pad = _round_up(hidden_dim, 128)
    input_pad = _round_up(input_dim, 128)
    head_half = _round_up(latent_dim, 64)      # 2*head_half is a multiple of 128

    def pad2(a, r, c):
        return jnp.zeros((r, c), jnp.float32).at[:a.shape[0], :a.shape[1]].set(a)

    w_enc_p = pad2(w_enc, input_dim, hidden_pad)
    b_enc_p = pad2(b_enc, 1, hidden_pad)

    w_head = jnp.zeros((hidden_pad, 2 * head_half), jnp.float32)
    w_head = w_head.at[:hidden_dim, :latent_dim].set(w_mu)
    w_head = w_head.at[:hidden_dim, head_half:head_half + latent_dim].set(w_lv)
    b_head = jnp.zeros((1, 2 * head_half), jnp.float32)
    b_head = b_head.at[:, :latent_dim].set(b_mu)
    b_head = b_head.at[:, head_half:head_half + latent_dim].set(b_lv)

    w_d1_p = pad2(w_d1, head_half, hidden_pad)   # zero rows for padded latent lanes
    b_d1_p = pad2(b_d1, 1, hidden_pad)
    w_d2_p = pad2(w_d2, hidden_pad, input_pad)
    b_d2_p = pad2(b_d2, 1, input_pad)

    def cast_w(w):
        return w if compute_dtype == jnp.float32 else w.astype(compute_dtype)

    packed = (cast_w(w_enc_p), b_enc_p,
              cast_w(w_head), b_head,
              cast_w(w_d1_p), b_d1_p,
              cast_w(w_d2_p), b_d2_p)
    return packed, head_half


# ----------------------------------------------------------------------------
# Wrapper
# ----------------------------------------------------------------------------
def vae_forward(x, eps, packed_params, latent_dim, *, tm=512,
                compute_dtype=jnp.bfloat16, min_grid_tiles=2):
    """Whole VAE forward in a single batch-tiled Pallas kernel.

    Returns (x_recon [B, D_in], mu [B, L], logvar [B, L]).
    """
    batch, input_dim = x.shape
    (w_enc, b_enc, w_head, b_head, w_d1, b_d1, w_d2, b_d2) = packed_params
    hidden_pad = w_enc.shape[1]
    head_half = w_d1.shape[0]
    input_pad = w_d2.shape[1]

    # ---- batch tile sizing ----
    padded_rows = _round_up(batch, 8)
    tm = min(_round_up(tm, 8), padded_rows)
    if min_grid_tiles > 1:
        # keep >= 2 tiles so both v7x TensorCores get work (harmless on v5e/v6e)
        tm = min(tm, _round_up(pl.cdiv(padded_rows, min_grid_tiles), 8))

    # VMEM budget: double-buffered activation tiles + pinned weights (counted x2
    # in case the Buffered(1) request falls back to default double-buffering).
    def act_bytes(t):
        return 2 * 4 * t * (input_dim + head_half + input_pad + 2 * head_half)
    weight_bytes = 2 * sum(int(p.size) * p.dtype.itemsize for p in packed_params)
    while act_bytes(tm) + weight_bytes > (40 << 20) and tm > 8:
        tm = max(8, _round_up(tm // 2, 8))

    padded_batch = _round_up(batch, tm)
    grid = (padded_batch // tm,)

    x_p = jnp.zeros((padded_batch, input_dim), jnp.float32).at[:batch].set(
        x.astype(jnp.float32))
    eps_p = jnp.zeros((padded_batch, head_half), jnp.float32).at[:batch, :latent_dim].set(
        eps.astype(jnp.float32))

    def row_spec(width):
        return pl.BlockSpec((tm, width), lambda i: (i, 0))

    buffered = getattr(pl, "Buffered", None)

    def pinned_spec(arr):
        # whole-array block, constant index_map -> VMEM-resident across steps;
        # request single-buffering (double-buffering a constant block wastes VMEM).
        idx = lambda i: (0, 0)
        if buffered is not None:
            try:
                return pl.BlockSpec(arr.shape, idx, pipeline_mode=buffered(1))
            except TypeError:
                pass
        return pl.BlockSpec(arr.shape, idx)

    in_specs = [row_spec(input_dim), row_spec(head_half)]
    in_specs += [pinned_spec(p) for p in packed_params]
    out_specs = (row_spec(input_pad), row_spec(2 * head_half))

    out_shape = (
        jax.ShapeDtypeStruct((padded_batch, input_pad), jnp.float32),      # x_recon (padded)
        jax.ShapeDtypeStruct((padded_batch, 2 * head_half), jnp.float32),  # fused [mu | logvar]
    )

    param_bytes = sum(int(p.size) * p.dtype.itemsize for p in packed_params)
    cost = pl.CostEstimate(
        flops=2 * padded_batch * (input_dim * hidden_pad
                                  + hidden_pad * 2 * head_half
                                  + head_half * hidden_pad
                                  + hidden_pad * input_pad),
        transcendentals=padded_batch * (head_half + input_pad),
        bytes_accessed=4 * padded_batch * (input_dim + 3 * head_half + input_pad)
                       + param_bytes,
    )

    vmem_limit = int(min(64 << 20, max(16 << 20, 2 * (act_bytes(tm) + weight_bytes))))

    kernel = functools.partial(_vae_kernel, head_half=head_half,
                               compute_dtype=compute_dtype)

    x_rec_p, head = pl.pallas_call(
        kernel,
        out_shape=out_shape,
        grid_spec=pltpu.PrefetchScalarGridSpec(
            num_scalar_prefetch=0,
            grid=grid,
            in_specs=in_specs,
            out_specs=out_specs,
        ),
        compiler_params=pltpu.CompilerParams(
            dimension_semantics=("parallel",),   # batch tiles shard across TCs on v7x
            vmem_limit_bytes=vmem_limit,         # explicit: v5e scoped default is 16 MiB
        ),
        cost_estimate=cost,
    )(x_p, eps_p, *packed_params)

    x_rec = x_rec_p[:batch, :input_dim]
    mu = head[:batch, :latent_dim]
    logvar = head[:batch, head_half:head_half + latent_dim]
    return x_rec, mu, logvar


def vae_forward_ref(x, eps, params):
    """Pure-JAX reference (unfused, unpadded weights) for correctness checking."""
    (w_enc, b_enc, w_mu, b_mu, w_lv, b_lv, w_d1, b_d1, w_d2, b_d2) = params
    hp = jax.lax.Precision.HIGHEST
    h = jnp.maximum(jnp.dot(x, w_enc, precision=hp) + b_enc, 0.0)
    mu = jnp.dot(h, w_mu, precision=hp) + b_mu
    logvar = jnp.dot(h, w_lv, precision=hp) + b_lv
    z = mu + eps * jnp.exp(0.5 * logvar)
    hd = jnp.maximum(jnp.dot(z, w_d1, precision=hp) + b_d1, 0.0)
    x_rec = jax.nn.sigmoid(jnp.dot(hd, w_d2, precision=hp) + b_d2)
    return x_rec, mu, logvar


if __name__ == "__main__":
    # small shapes consistent with the module's (input_dim, hidden_dim, latent_dim) API;
    # batch=200 is deliberately not a tile multiple to exercise padding + a 2-step grid.
    batch, input_dim, hidden_dim, latent_dim = 200, 64, 32, 16

    key = jax.random.PRNGKey(0)
    k_params, k_x, k_eps = jax.random.split(key, 3)

    params = init_vae_params(k_params, input_dim, hidden_dim, latent_dim)

    # bernoulli-style inputs in [0, 1]
    x = jax.random.uniform(k_x, (batch, input_dim), jnp.float32)
    eps = jax.random.normal(k_eps, (batch, latent_dim), jnp.float32)

    x_rec_ref, mu_ref, lv_ref = vae_forward_ref(x, eps, params)

    # ---- performance-default path: bf16 MXU matmuls, bf16-resident weights ----
    packed_bf16, _ = pack_vae_params(params, latent_dim, compute_dtype=jnp.bfloat16)
    x_rec, mu, logvar = vae_forward(x, eps, packed_bf16, latent_dim,
                                    compute_dtype=jnp.bfloat16)
    jax.block_until_ready((x_rec, mu, logvar))

    assert x_rec.shape == (batch, input_dim)
    assert mu.shape == (batch, latent_dim) and logvar.shape == (batch, latent_dim)
    assert bool(jnp.all(jnp.isfinite(x_rec))) and bool(jnp.all(jnp.isfinite(mu)))
    assert jnp.allclose(x_rec, x_rec_ref, atol=5e-2), "bf16 x_recon mismatch"
    assert jnp.allclose(mu, mu_ref, atol=5e-2), "bf16 mu mismatch"
    assert jnp.allclose(logvar, lv_ref, atol=5e-2), "bf16 logvar mismatch"

    # ---- bit-tight reference-check path: f32 weights, HIGHEST precision ----
    packed_f32, _ = pack_vae_params(params, latent_dim, compute_dtype=jnp.float32)
    x_rec32, mu32, lv32 = vae_forward(x, eps, packed_f32, latent_dim,
                                      compute_dtype=jnp.float32)
    jax.block_until_ready((x_rec32, mu32, lv32))

    assert jnp.allclose(x_rec32, x_rec_ref, atol=2e-5), "f32 x_recon mismatch"
    assert jnp.allclose(mu32, mu_ref, atol=2e-5), "f32 mu mismatch"
    assert jnp.allclose(lv32, lv_ref, atol=2e-5), "f32 logvar mismatch"

    print("KERNEL_OK")
</pallas_src>

<mosaic_0001>
module attributes {stable_mosaic.version = 11 : i64} {
  func.func @_vae_kernel(%arg0: i32, %arg1: memref<104x64xf32, #tpu.memory_space<vmem>>, %arg2: memref<104x64xf32, #tpu.memory_space<vmem>>, %arg3: memref<64x128xbf16, #tpu.memory_space<vmem>>, %arg4: memref<1x128xf32, #tpu.memory_space<vmem>>, %arg5: memref<128x128xbf16, #tpu.memory_space<vmem>>, %arg6: memref<1x128xf32, #tpu.memory_space<vmem>>, %arg7: memref<64x128xbf16, #tpu.memory_space<vmem>>, %arg8: memref<1x128xf32, #tpu.memory_space<vmem>>, %arg9: memref<128x128xbf16, #tpu.memory_space<vmem>>, %arg10: memref<1x128xf32, #tpu.memory_space<vmem>>, %arg11: memref<104x128xf32, #tpu.memory_space<vmem>>, %arg12: memref<104x128xf32, #tpu.memory_space<vmem>>) attributes {dimension_semantics = [#tpu.dimension_semantics<parallel>], iteration_bounds = array<i64: 2>, scalar_prefetch = 0 : i64, scratch_operands = 0 : i64, tpu.core_type = #tpu.core_type<tc>, window_params = [{transform_indices = @transform_0, window_bounds = array<i64: 104, 64>}, {transform_indices = @transform_1, window_bounds = array<i64: 104, 64>}, {pipeline_mode = #tpu.pipeline_mode<synchronous>, transform_indices = @transform_2, window_bounds = array<i64: 64, 128>}, {pipeline_mode = #tpu.pipeline_mode<synchronous>, transform_indices = @transform_3, window_bounds = array<i64: 1, 128>}, {pipeline_mode = #tpu.pipeline_mode<synchronous>, transform_indices = @transform_4, window_bounds = array<i64: 128, 128>}, {pipeline_mode = #tpu.pipeline_mode<synchronous>, transform_indices = @transform_5, window_bounds = array<i64: 1, 128>}, {pipeline_mode = #tpu.pipeline_mode<synchronous>, transform_indices = @transform_6, window_bounds = array<i64: 64, 128>}, {pipeline_mode = #tpu.pipeline_mode<synchronous>, transform_indices = @transform_7, window_bounds = array<i64: 1, 128>}, {pipeline_mode = #tpu.pipeline_mode<synchronous>, transform_indices = @transform_8, window_bounds = array<i64: 128, 128>}, {pipeline_mode = #tpu.pipeline_mode<synchronous>, transform_indices = @transform_9, window_bounds = array<i64: 1, 128>}, {transform_indices = @transform_10, window_bounds = array<i64: 104, 128>}, {transform_indices = @transform_11, window_bounds = array<i64: 104, 128>}]} {
    %c0 = arith.constant 0 : index
    %c0_0 = arith.constant 0 : index
    %0 = vector.load %arg1[%c0, %c0_0] : memref<104x64xf32, #tpu.memory_space<vmem>>, vector<104x64xf32>
    %c0_1 = arith.constant 0 : index
    %c0_2 = arith.constant 0 : index
    %1 = vector.load %arg2[%c0_1, %c0_2] : memref<104x64xf32, #tpu.memory_space<vmem>>, vector<104x64xf32>
    %c0_3 = arith.constant 0 : index
    %c0_4 = arith.constant 0 : index
    %2 = vector.load %arg3[%c0_3, %c0_4] : memref<64x128xbf16, #tpu.memory_space<vmem>>, vector<64x128xbf16>
    %3 = arith.truncf %0 : vector<104x64xf32> to vector<104x64xbf16>
    %cst = arith.constant dense<0.000000e+00> : vector<104x128xf32>
    %4 = tpu.matmul %3, %2, %cst {dimension_numbers = #tpu.dot_dimension_numbers<[1], [0], [0], [1], [0, 0, 1, 1], [], []>} : vector<104x64xbf16>, vector<64x128xbf16>, vector<104x128xf32> -> vector<104x128xf32>
    %c0_5 = arith.constant 0 : index
    %c0_6 = arith.constant 0 : index
    %5 = vector.load %arg4[%c0_5, %c0_6] : memref<1x128xf32, #tpu.memory_space<vmem>>, vector<1x128xf32>
    %6 = vector.broadcast %5 : vector<1x128xf32> to vector<104x128xf32>
    %7 = arith.addf %4, %6 : vector<104x128xf32>
    %cst_7 = arith.constant 0.000000e+00 : f32
    %8 = vector.broadcast %cst_7 : f32 to vector<104x128xf32>
    %9 = arith.maximumf %7, %8 : vector<104x128xf32>
    %c0_8 = arith.constant 0 : index
    %c0_9 = arith.constant 0 : index
    %10 = vector.load %arg5[%c0_8, %c0_9] : memref<128x128xbf16, #tpu.memory_space<vmem>>, vector<128x128xbf16>
    %11 = arith.truncf %9 : vector<104x128xf32> to vector<104x128xbf16>
    %cst_10 = arith.constant dense<0.000000e+00> : vector<104x128xf32>
    %12 = tpu.matmul %11, %10, %cst_10 {dimension_numbers = #tpu.dot_dimension_numbers<[1], [0], [0], [1], [0, 0, 1, 1], [], []>} : vector<104x128xbf16>, vector<128x128xbf16>, vector<104x128xf32> -> vector<104x128xf32>
    %c0_11 = arith.constant 0 : index
    %c0_12 = arith.constant 0 : index
    %13 = vector.load %arg6[%c0_11, %c0_12] : memref<1x128xf32, #tpu.memory_space<vmem>>, vector<1x128xf32>
    %14 = vector.broadcast %13 : vector<1x128xf32> to vector<104x128xf32>
    %15 = arith.addf %12, %14 : vector<104x128xf32>
    %c0_13 = arith.constant 0 : index
    %c0_14 = arith.constant 0 : index
    %16 = vector.load %arg12[%c0_13, %c0_14] : memref<104x128xf32, #tpu.memory_space<vmem>>, vector<104x128xf32>
    tpu.vector_store %arg12[%c0_13, %c0_14], %15 {strides = array<i32>} : memref<104x128xf32, #tpu.memory_space<vmem>>, vector<104x128xf32>,
    %17 = vector.extract_strided_slice %15 {offsets = [0, 0], sizes = [104, 64], strides = [1, 1]} : vector<104x128xf32> to vector<104x64xf32>
    %18 = vector.extract_strided_slice %15 {offsets = [0, 64], sizes = [104, 64], strides = [1, 1]} : vector<104x128xf32> to vector<104x64xf32>
    %cst_15 = arith.constant 5.000000e-01 : f32
    %19 = vector.broadcast %cst_15 : f32 to vector<104x64xf32>
    %20 = arith.mulf %19, %18 : vector<104x64xf32>
    %21 = math.exp %20 : vector<104x64xf32>
    %22 = arith.mulf %1, %21 : vector<104x64xf32>
    %23 = arith.addf %17, %22 : vector<104x64xf32>
    %c0_16 = arith.constant 0 : index
    %c0_17 = arith.constant 0 : index
    %24 = vector.load %arg7[%c0_16, %c0_17] : memref<64x128xbf16, #tpu.memory_space<vmem>>, vector<64x128xbf16>
    %25 = arith.truncf %23 : vector<104x64xf32> to vector<104x64xbf16>
    %cst_18 = arith.constant dense<0.000000e+00> : vector<104x128xf32>
    %26 = tpu.matmul %25, %24, %cst_18 {dimension_numbers = #tpu.dot_dimension_numbers<[1], [0], [0], [1], [0, 0, 1, 1], [], []>} : vector<104x64xbf16>, vector<64x128xbf16>, vector<104x128xf32> -> vector<104x128xf32>
    %c0_19 = arith.constant 0 : index
    %c0_20 = arith.constant 0 : index
    %27 = vector.load %arg8[%c0_19, %c0_20] : memref<1x128xf32, #tpu.memory_space<vmem>>, vector<1x128xf32>
    %28 = vector.broadcast %27 : vector<1x128xf32> to vector<104x128xf32>
    %29 = arith.addf %26, %28 : vector<104x128xf32>
    %cst_21 = arith.constant 0.000000e+00 : f32
    %30 = vector.broadcast %cst_21 : f32 to vector<104x128xf32>
    %31 = arith.maximumf %29, %30 : vector<104x128xf32>
    %c0_22 = arith.constant 0 : index
    %c0_23 = arith.constant 0 : index
    %32 = vector.load %arg9[%c0_22, %c0_23] : memref<128x128xbf16, #tpu.memory_space<vmem>>, vector<128x128xbf16>
    %33 = arith.truncf %31 : vector<104x128xf32> to vector<104x128xbf16>
    %cst_24 = arith.constant dense<0.000000e+00> : vector<104x128xf32>
    %34 = tpu.matmul %33, %32, %cst_24 {dimension_numbers = #tpu.dot_dimension_numbers<[1], [0], [0], [1], [0, 0, 1, 1], [], []>} : vector<104x128xbf16>, vector<128x128xbf16>, vector<104x128xf32> -> vector<104x128xf32>
    %c0_25 = arith.constant 0 : index
    %c0_26 = arith.constant 0 : index
    %35 = vector.load %arg10[%c0_25, %c0_26] : memref<1x128xf32, #tpu.memory_space<vmem>>, vector<1x128xf32>
    %36 = vector.broadcast %35 : vector<1x128xf32> to vector<104x128xf32>
    %37 = arith.addf %34, %36 : vector<104x128xf32>
    %38 = arith.negf %37 : vector<104x128xf32>
    %39 = math.exp %38 : vector<104x128xf32>
    %cst_27 = arith.constant 1.000000e+00 : f32
    %40 = vector.broadcast %cst_27 : f32 to vector<104x128xf32>
    %41 = arith.addf %40, %39 : vector<104x128xf32>
    %42 = arith.divf %40, %41 : vector<104x128xf32>
    %c0_28 = arith.constant 0 : index
    %c0_29 = arith.constant 0 : index
    %43 = vector.load %arg11[%c0_28, %c0_29] : memref<104x128xf32, #tpu.memory_space<vmem>>, vector<104x128xf32>
    tpu.vector_store %arg11[%c0_28, %c0_29], %42 {strides = array<i32>} : memref<104x128xf32, #tpu.memory_space<vmem>>, vector<104x128xf32>,
    return
  }
  func.func @transform_0(%arg0: i32) -> (i32, i32) {
    %c0_i32 = arith.constant 0 : i32
    %c0_i32_0 = arith.constant 0 : i32
    return %arg0, %c0_i32 : i32, i32
  }
  func.func @transform_1(%arg0: i32) -> (i32, i32) {
    %c0_i32 = arith.constant 0 : i32
    %c0_i32_0 = arith.constant 0 : i32
    return %arg0, %c0_i32 : i32, i32
  }
  func.func @transform_2(%arg0: i32) -> (i32, i32) {
    %c0_i32 = arith.constant 0 : i32
    %c0_i32_0 = arith.constant 0 : i32
    %c0_i32_1 = arith.constant 0 : i32
    return %c0_i32, %c0_i32_0 : i32, i32
  }
  func.func @transform_3(%arg0: i32) -> (i32, i32) {
    %c0_i32 = arith.constant 0 : i32
    %c0_i32_0 = arith.constant 0 : i32
    %c0_i32_1 = arith.constant 0 : i32
    return %c0_i32, %c0_i32_0 : i32, i32
  }
  func.func @transform_4(%arg0: i32) -> (i32, i32) {
    %c0_i32 = arith.constant 0 : i32
    %c0_i32_0 = arith.constant 0 : i32
    %c0_i32_1 = arith.constant 0 : i32
    return %c0_i32, %c0_i32_0 : i32, i32
  }
  func.func @transform_5(%arg0: i32) -> (i32, i32) {
    %c0_i32 = arith.constant 0 : i32
    %c0_i32_0 = arith.constant 0 : i32
    %c0_i32_1 = arith.constant 0 : i32
    return %c0_i32, %c0_i32_0 : i32, i32
  }
  func.func @transform_6(%arg0: i32) -> (i32, i32) {
    %c0_i32 = arith.constant 0 : i32
    %c0_i32_0 = arith.constant 0 : i32
    %c0_i32_1 = arith.constant 0 : i32
    return %c0_i32, %c0_i32_0 : i32, i32
  }
  func.func @transform_7(%arg0: i32) -> (i32, i32) {
    %c0_i32 = arith.constant 0 : i32
    %c0_i32_0 = arith.constant 0 : i32
    %c0_i32_1 = arith.constant 0 : i32
    return %c0_i32, %c0_i32_0 : i32, i32
  }
  func.func @transform_8(%arg0: i32) -> (i32, i32) {
    %c0_i32 = arith.constant 0 : i32
    %c0_i32_0 = arith.constant 0 : i32
    %c0_i32_1 = arith.constant 0 : i32
    return %c0_i32, %c0_i32_0 : i32, i32
  }
  func.func @transform_9(%arg0: i32) -> (i32, i32) {
    %c0_i32 = arith.constant 0 : i32
    %c0_i32_0 = arith.constant 0 : i32
    %c0_i32_1 = arith.constant 0 : i32
    return %c0_i32, %c0_i32_0 : i32, i32
  }
  func.func @transform_10(%arg0: i32) -> (i32, i32) {
    %c0_i32 = arith.constant 0 : i32
    %c0_i32_0 = arith.constant 0 : i32
    return %arg0, %c0_i32 : i32, i32
  }
  func.func @transform_11(%arg0: i32) -> (i32, i32) {
    %c0_i32 = arith.constant 0 : i32
    %c0_i32_0 = arith.constant 0 : i32
    return %arg0, %c0_i32 : i32, i32
  }
}

</mosaic_0001>

<bundles_post_ra>
// kernel: tpu_custom_call.1
= control target key start
LH: loop header
LB: loop body
LE: loop exit
PB: predicated region body
PF: predicated region fallthrough
CT: control target
= control target key end

     0   :  { %s2628_s0 = inlined_call_operand.vmem [shape: f32[208,64], index: 0, kind: input, shape index: {}]   ;;  %s2629_s1 = inlined_call_operand.vmem [shape: f32[208,64], index: 1, kind: input, shape index: {}]   ;;  %s2630_s2 = inlined_call_operand.vmem [shape: bf16[64,128], index: 2, kind: input, shape index: {}]   ;;  %s2631_s3 = inlined_call_operand.vmem [shape: f32[1,128], index: 3, kind: input, shape index: {}]   ;;  %s2632_s4 = inlined_call_operand.vmem [shape: bf16[128,128], index: 4, kind: input, shape index: {}]   ;;  %s2633_s5 = inlined_call_operand.vmem [shape: f32[1,128], index: 5, kind: input, shape index: {}]   ;;  %s2634_s6 = inlined_call_operand.vmem [shape: bf16[64,128], index: 6, kind: input, shape index: {}]   ;;  %s2635_s7 = inlined_call_operand.vmem [shape: f32[1,128], index: 7, kind: input, shape index: {}]   ;;  %s2636_s8 = inlined_call_operand.vmem [shape: bf16[128,128], index: 8, kind: input, shape index: {}]   ;;  %s2637_s9 = inlined_call_operand.vmem [shape: f32[1,128], index: 9, kind: input, shape index: {}]   ;;  %s2638_s10 = inlined_call_operand.hbm [shape: f32[208,128], index: 10, kind: output, shape index: {0}]   ;;  %s2639_s11 = inlined_call_operand.hbm [shape: f32[208,128], index: 11, kind: output, shape index: {1}]  }
   0x1   :  { %2644 = sst [smem:[#allocation8_spill]] %s2628_s0 }
   0x2   :  { %2645 = sst [smem:[#allocation9_spill]] %s2629_s1 }
   0x3   :  { %17 = vsyncpa [#allocation3], 0 }
   0x4   :  { %19 = vsyncpa [#allocation3 + $0x1], 0 }
   0x5   :  { %20 = vsyncpa [#allocation5], 0 }
   0x6   :  { %22 = vsyncpa [#allocation5 + $0x1], 0  ;;  %s2086_s17 = smov 0   ;;  %s2088_s18 = smov 0  }
   0x7   :  { %s2090_s19 = smov 0   ;;  %s2092_s20 = smov 0  }
   0x8 LB: > { %s2107_s21 = sadd.s32 4294967295, %s2017_s20   ;;  %s1480_s22 = sadd.s32 4294967294, %s2017_s20   ;;  %s2017_s20 = sphi %s2092_s20, %s2658_s20   ;;  %s2013_s19 = sphi %s2090_s19, %s2657_s19   ;;  %s2009_s18 = sphi %s2088_s18, %s2656_s18   ;;  %s2005_s17 = sphi %s2086_s17, %s2655_s17  }
   0x9   : > { %s2111_s23 = sadd.s32 1, %s2017_s20   ;;  %s255_s24 = sadd.s32 1, %s2013_s19 }
   0xa   : > { %s252_s25 = ssub.s32 %s2017_s20, %s2111_s23  ;;  %p265_p0 = scmp.ne.s32.totalorder %s2013_s19, %s2009_s18 }
   0xb   : > { %p253_p1 = scmp.eq.s32.totalorder %s252_s25, 0  ;;  %p266_p2 = scmp.eq.s32.totalorder %s2107_s21, 1 }
   0xc   : > { %p271_p3 = scmp.ne.s32.totalorder %s2009_s18, %s2005_s17  ;;  %p272_p4 = scmp.eq.s32.totalorder %s1480_s22, 1 }
   0xd   : > { %s2122_s26 = scalar_select %p253_p1, %s2013_s19, %s255_s24  }
   0xe   : > { %p2124_p5 = por %p266_p2, %p265_p0  ;;  %p2128_p6 = por %p272_p4, %p271_p3 }
   0xf   : > { %p1483_p7 = scmp.ge.s32.totalorder %s2017_s20, 1  ;;  %p358_p8 = scmp.lt.s32.totalorder %s2017_s20, 3 }
  0x11   : > { %p359_p9 = pnand %p1483_p7, %p358_p8 }
  0x12   : > { %s408_s14 = smul.u32 (!%p359_p9), 13, %s2107_s21  ;;  %s2648_s0 = sld [smem:[#allocation8_spill]] (!%p359_p9) }
  0x13   : > { %362 = sbr.rel (%p359_p9) target bundleno = 1075 (0x433), region = 60  ;;  %s2282_s16 = sand.u32 (!%p359_p9), 1, %s2009_s18  }
  0x14   : > { %p409_p10 = scmp.lt.s32.totalorder (!%p359_p9), %s408_s14, 25  ;;  %s2640_s24 = smul.u32 (!%p359_p9), 104, %s2282_s16 }
  0x15   : > { %s2021_s12 = smov (!%p359_p9), 64   ;;  %s2650_s1 = sld [smem:[#allocation9_spill]] (!%p359_p9) }
  0x16   : > { %s2022_s29 = smov (!%p359_p9), [#allocation4]  }
  0x18   : > { %v1825_v0 = vld [vmem:[%s2630_s2 + $0x18] sm:$0xff]   ;;  %v2019_v1 = vmov 0.0   ;;  %v1826_v2 = vld [vmem:[%s2630_s2 + $0x10] sm:$0xff]   ;;  %vm2020_vm0 = vmmov 0   ;;  %v1827_v4 = vld [vmem:[%s2630_s2 + $0x8] sm:$0xff]   ;;  %s2660_s14 = smov (!%p409_p10, %s408_s14), 25 }
  0x19   : > { %1599 = vmatprep.subr.bf16.mxu0 %v2019_v1  ;;  %1635 = vmatprep.subr.bf16.mxu1 %v2019_v1  ;;  %v1829_v3 = vld [vmem:[%s2632_s4 + $0x38] sm:$0xff]   ;;  %v1830_v5 = vld [vmem:[%s2632_s4 + $0x30] sm:$0xff]   ;;  %s2641_s30 = sshll.u32 %s2660_s14, 3  ;;  %v1828_v6 = vld [vmem:[%s2630_s2] sm:$0xff]   ;;  %vm495_vm1 = vcmask 523264  }
  0x1a   : > { %1600 = vmatpush3.bf16.msra.mxu0 %v1825_v0  ;;  %1607 = vmatprep.mubr.msk.bf16.mxu0 %vm2020_vm0, %v2019_v1  ;;  %s2170_s22 = scalar_lea.vmem %s2648_s0, %s2641_s30  ;;  %v1831_v9 = vld [vmem:[%s2632_s4 + $0x28] sm:$0xff]   ;;  %v1832_v11 = vld [vmem:[%s2632_s4 + $0x20] sm:$0xff]   ;;  %v1833_v14 = vld [vmem:[%s2632_s4 + $0x18] sm:$0xff]   ;;  %s1931_s30 = sshll.u32 %s2022_s29, 4  ;;  %s1932_s30 = int_to_ptr.vmem [resolvable:$false] %s1931_s30 }
  0x1b   : > { %1601 = vmatprep.subr.bf16.mxu0 %v2019_v1  ;;  %1651 = vmatprep.mubr.msk.bf16.mxu1 %vm2020_vm0, %v2019_v1  ;;  %v423_v7 = vld [vmem:[%s2170_s22] sm:$0xff]  ;;  %v424_v8 = vld [vmem:[%s2170_s22 + $0x8] sm:$0xff]  ;;  %v425_v12 = vld [vmem:[%s2170_s22 + $0x10] sm:$0xff] }
  0x1c   : > { %1636 = vmatpush3.bf16.msra.mxu1 %v1829_v3  ;;  %v457_v10 = vpack.c.bf16 %v424_v8, %v423_v7  ;;  %v426_v13 = vld [vmem:[%s2170_s22 + $0x18] sm:$0xff]  ;;  %v427_v16 = vld [vmem:[%s2170_s22 + $0x20] sm:$0xff]  ;;  %v428_v17 = vld [vmem:[%s2170_s22 + $0x28] sm:$0xff] }
  0x1d   : > { %1637 = vmatprep.subr.bf16.mxu1 %v2019_v1  ;;  %v458_v15 = vpack.c.bf16 %v426_v13, %v425_v12  ;;  %v459_v18 = vpack.c.bf16 %v428_v17, %v427_v16  ;;  %v429_v19 = vld [vmem:[%s2170_s22 + $0x30] sm:$0xff]  ;;  %v430_v20 = vld [vmem:[%s2170_s22 + $0x38] sm:$0xff]  ;;  %v431_v22 = vld [vmem:[%s2170_s22 + $0x40] sm:$0xff] }
  0x1e   : > { %1602 = vmatpush3.bf16.msra.mxu0 %v1826_v2  ;;  %v460_v21 = vpack.c.bf16 %v430_v20, %v429_v19  ;;  %v432_v23 = vld [vmem:[%s2170_s22 + $0x48] sm:$0xff]  ;;  %v433_v25 = vld [vmem:[%s2170_s22 + $0x50] sm:$0xff]  ;;  %v434_v26 = vld [vmem:[%s2170_s22 + $0x58] sm:$0xff] }
  0x1f   : > { %1603 = vmatprep.subr.bf16.mxu0 %v2019_v1  ;;  %v461_v24 = vpack.c.bf16 %v432_v23, %v431_v22  ;;  %v462_v27 = vpack.c.bf16 %v434_v26, %v433_v25  ;;  %v435_v28 = vld [vmem:[%s2170_s22 + $0x60] sm:$0xff]  ;;  %v1834_v30 = vld [vmem:[%s2632_s4 + $0x10] sm:$0xff]   ;;  %v1835_v31 = vld [vmem:[%s2632_s4 + $0x8] sm:$0xff]   ;;  %s2295_s22 = scalar_lea.vmem [#allocation4], %s2640_s24  ;;  %s2649_s24 = sshll.u32 %s2660_s14, 3 }
  0x20   : > { %1638 = vmatpush3.bf16.msra.mxu1 %v1830_v5  ;;  %v463_v29 = vpack.c.bf16 %v435_v28, %v435_v28  ;;  %v1836_v32 = vld [vmem:[%s2632_s4] sm:$0xff]   ;;  %s2414_s0 = scalar_lea.vmem %s2650_s1, %s2649_s24  ;;  %s2642_s24 = smul.u32 1664, %s2107_s21 }
  0x21   : > { %1639 = vmatprep.subr.bf16.mxu1 %v2019_v1  ;;  %v2236_v33 = vld [vmem:[%s2631_s3] ss:$0 sm:$0xff]  ;;  %s1374_s13 = sshll.u32 %s2295_s22, 4  ;;  %s2514_s13 = int_to_ptr.vmem [resolvable:$true] %s1374_s13 }
  0x22   : > { %1604 = vmatpush3.bf16.msra.mxu0 %v1827_v4  ;;  %s2512_s14 = scalar_lea.hbm %s2639_s11, %s2642_s24  ;;  %s1927_s25 = scalar_lea.vmem %s2514_s13, 1664 }
  0x23   : > { %1605 = vmatprep.subr.bf16.mxu0 %v2019_v1  ;;  %p1928_p11 = scmp.ne.s32.totalorder %s2514_s13, %s1927_s25  ;;  %p1934_p0 = scmp.lt.s32.totalorder %s2514_s13, %s1932_s30 }
  0x24   : > { %1640 = vmatpush3.bf16.msra.mxu1 %v1831_v9 }
  0x25   : > { %1641 = vmatprep.subr.bf16.mxu1 %v2019_v1  ;;  %p1929_p12 = pnand %p1928_p11, %p2124_p5 }
  0x26   : > { %1606 = vmatpush3.bf16.msra.mxu0 %v1828_v6 }
  0x27   : > { %1679 = vmatprep.subr.bf16.mxu0 %v2019_v1  ;;  %p1930_p13 = pneg %p1929_p12 }
  0x28   : > { %1642 = vmatpush3.bf16.msra.mxu1 %v1832_v11 }
  0x29   : > { %1608 = vmatmul.mubr.msk.bf16.vlgmr.msra.gmra.mxu0 %vm495_vm1, %v457_v10  ;;  %1643 = vmatprep.subr.bf16.mxu1 %v2019_v1 }
  0x2a   : > { %1611 = vmatprep.mubr.msk.bf16.mxu0 %vm2020_vm0, %v2019_v1 }
  0x2c   : > { %1644 = vmatpush3.bf16.msra.mxu1 %v1833_v14 }
  0x2d   : > { %1645 = vmatprep.subr.bf16.mxu1 %v2019_v1 }
  0x30   : > { %1646 = vmatpush3.bf16.msra.mxu1 %v1834_v30 }
  0x31   : > { %1612 = vmatmul.mubr.msk.bf16.gmra.mxu0 %vm495_vm1, %v458_v15  ;;  %1647 = vmatprep.subr.bf16.mxu1 %v2019_v1 }
  0x32   : > { %1615 = vmatprep.mubr.msk.bf16.mxu0 %vm2020_vm0, %v2019_v1 }
  0x34   : > { %1648 = vmatpush3.bf16.msra.mxu1 %v1835_v31 }
  0x35   : > { %1649 = vmatprep.subr.bf16.mxu1 %v2019_v1 }
  0x38   : > { %1650 = vmatpush3.bf16.msra.mxu1 %v1836_v32  ;;  %v1837_v32 = vld [vmem:[%s2634_s6 + $0x18] sm:$0xff]  }
  0x39   : > { %1616 = vmatmul.mubr.msk.bf16.gmra.mxu0 %vm495_vm1, %v459_v18  ;;  %1759 = vmatprep.subr.bf16.mxu1 %v2019_v1 }
  0x3a   : > { %1619 = vmatprep.mubr.msk.bf16.mxu0 %vm2020_vm0, %v2019_v1  ;;  %1680 = vmatpush3.bf16.msra.mxu0 %v1837_v32 }
  0x3b   : > { %1681 = vmatprep.subr.bf16.mxu0 %v2019_v1 }
  0x41   : > { %1620 = vmatmul.mubr.msk.bf16.gmra.mxu0 %vm495_vm1, %v460_v21 }
  0x42   : > { %1623 = vmatprep.mubr.msk.bf16.mxu0 %vm2020_vm0, %v2019_v1 }
  0x49   : > { %1624 = vmatmul.mubr.msk.bf16.gmra.mxu0 %vm495_vm1, %v461_v24 }
  0x4a   : > { %1627 = vmatprep.mubr.msk.bf16.mxu0 %vm2020_vm0, %v2019_v1 }
  0x51   : > { %1628 = vmatmul.mubr.msk.bf16.gmra.mxu0 %vm495_vm1, %v462_v27 }
  0x52   : > { %1631 = vmatprep.mubr.msk.bf16.mxu0 %vm2020_vm0, %v2019_v1 }
  0x59   : > { %1632 = vmatmul.mubr.msk.bf16.gmra.mxu0 %vm495_vm1, %v463_v29 }
  0x5a   : > { %1687 = vmatprep.mubr.msk.bf16.mxu0 %vm2020_vm0, %v2019_v1 }
  0xe9   : > { %v551_v34 = vpop.f32.mrf.mxu0 }
  0xea   : > { %v552_v36 = vadd.f32 %v2236_v33, %v551_v34  ;;  %v1839_v34 = vld [vmem:[%s2634_s6 + $0x8] sm:$0xff]  }
  0xeb   : > { %v1609_v35 = vpop.f32.mrf.mxu0 }
  0xec   : > { %v605_v40 = vmax.f32 %v552_v36, 0.0  ;;  %v1840_v35 = vld [vmem:[%s2634_s6] sm:$0xff]  }
  0xed   : > { %v554_v37 = vpop.f32.mrf.mxu0  ;;  %v2288_v36 = vld [vmem:[%s2633_s5] ss:$0 sm:$0xff] }
  0xee   : > { %v555_v38 = vadd.f32 %v2236_v33, %v554_v37 }
  0xef   : > { %v1610_v39 = vpop.f32.mrf.mxu0 }
  0xf0   : > { %v606_v41 = vmax.f32 %v555_v38, 0.0 }
  0xf1   : > { %v559_v42 = vpop.f32.mrf.mxu0 }
  0xf2   : > { %v634_v43 = vpack.c.bf16 %v606_v41, %v605_v40  ;;  %v560_v45 = vadd.f32 %v2236_v33, %v559_v42 }
  0xf3   : > { %v1613_v44 = vpop.f32.mrf.mxu0 }
  0xf4   : > { %1652 = vmatmul.mubr.bf16.vlgmr.msra.gmra.mxu1 %v634_v43  ;;  %v607_v49 = vmax.f32 %v560_v45, 0.0 }
  0xf5   : > { %v562_v46 = vpop.f32.mrf.mxu0  ;;  %1655 = vmatprep.mubr.msk.bf16.mxu1 %vm2020_vm0, %v2019_v1 }
  0xf6   : > { %v563_v47 = vadd.f32 %v2236_v33, %v562_v46 }
  0xf7   : > { %v1614_v48 = vpop.f32.mrf.mxu0 }
  0xf8   : > { %v608_v50 = vmax.f32 %v563_v47, 0.0 }
  0xf9   : > { %v567_v51 = vpop.f32.mrf.mxu0 }
  0xfa   : > { %v635_v52 = vpack.c.bf16 %v608_v50, %v607_v49  ;;  %v568_v54 = vadd.f32 %v2236_v33, %v567_v51 }
  0xfb   : > { %v1617_v53 = vpop.f32.mrf.mxu0 }
  0xfc   : > { %1656 = vmatmul.mubr.bf16.gmra.mxu1 %v635_v52  ;;  %v609_v58 = vmax.f32 %v568_v54, 0.0 }
  0xfd   : > { %v570_v55 = vpop.f32.mrf.mxu0  ;;  %1659 = vmatprep.mubr.msk.bf16.mxu1 %vm2020_vm0, %v2019_v1 }
  0xfe   : > { %v571_v56 = vadd.f32 %v2236_v33, %v570_v55 }
  0xff   : > { %v1618_v57 = vpop.f32.mrf.mxu0 }
 0x100   : > { %v610_v59 = vmax.f32 %v571_v56, 0.0 }
 0x101   : > { %v575_v60 = vpop.f32.mrf.mxu0 }
 0x102   : > { %v636_v61 = vpack.c.bf16 %v610_v59, %v609_v58  ;;  %v576_v63 = vadd.f32 %v2236_v33, %v575_v60 }
 0x103   : > { %v1621_v62 = vpop.f32.mrf.mxu0 }
 0x104   : > { %1660 = vmatmul.mubr.bf16.gmra.mxu1 %v636_v61  ;;  %v611_v4 = vmax.f32 %v576_v63, 0.0 }
 0x105   : > { %v578_v0 = vpop.f32.mrf.mxu0  ;;  %1663 = vmatprep.mubr.msk.bf16.mxu1 %vm2020_vm0, %v2019_v1 }
 0x106   : > { %v579_v2 = vadd.f32 %v2236_v33, %v578_v0 }
 0x107   : > { %v1622_v3 = vpop.f32.mrf.mxu0 }
 0x108   : > { %v612_v5 = vmax.f32 %v579_v2, 0.0 }
 0x109   : > { %v583_v6 = vpop.f32.mrf.mxu0 }
 0x10a   : > { %v637_v7 = vpack.c.bf16 %v612_v5, %v611_v4  ;;  %v584_v9 = vadd.f32 %v2236_v33, %v583_v6 }
 0x10b   : > { %v1625_v8 = vpop.f32.mrf.mxu0 }
 0x10c   : > { %1664 = vmatmul.mubr.bf16.gmra.mxu1 %v637_v7  ;;  %v613_v13 = vmax.f32 %v584_v9, 0.0 }
 0x10d   : > { %v586_v10 = vpop.f32.mrf.mxu0  ;;  %1667 = vmatprep.mubr.msk.bf16.mxu1 %vm2020_vm0, %v2019_v1 }
 0x10e   : > { %v587_v11 = vadd.f32 %v2236_v33, %v586_v10 }
 0x10f   : > { %v1626_v12 = vpop.f32.mrf.mxu0 }
 0x110   : > { %v614_v14 = vmax.f32 %v587_v11, 0.0 }
 0x111   : > { %v591_v15 = vpop.f32.mrf.mxu0 }
 0x112   : > { %v638_v16 = vpack.c.bf16 %v614_v14, %v613_v13  ;;  %v592_v18 = vadd.f32 %v2236_v33, %v591_v15 }
 0x113   : > { %v1629_v17 = vpop.f32.mrf.mxu0 }
 0x114   : > { %1668 = vmatmul.mubr.bf16.gmra.mxu1 %v638_v16  ;;  %v615_v22 = vmax.f32 %v592_v18, 0.0 }
 0x115   : > { %v594_v19 = vpop.f32.mrf.mxu0  ;;  %1671 = vmatprep.mubr.msk.bf16.mxu1 %vm2020_vm0, %v2019_v1 }
 0x116   : > { %v595_v20 = vadd.f32 %v2236_v33, %v594_v19 }
 0x117   : > { %v1630_v21 = vpop.f32.mrf.mxu0 }
 0x118   : > { %v616_v23 = vmax.f32 %v595_v20, 0.0 }
 0x119   : > { %v599_v24 = vpop.f32.mrf.mxu0 }
 0x11a   : > { %v639_v25 = vpack.c.bf16 %v616_v23, %v615_v22  ;;  %v600_v26 = vadd.f32 %v2236_v33, %v599_v24  ;;  %v1838_v33 = vld [vmem:[%s2634_s6 + $0x10] sm:$0xff]  }
 0x11b   : > { %v1633_v27 = vpop.f32.mrf.mxu0  ;;  %1682 = vmatpush3.bf16.msra.mxu0 %v1838_v33 }
 0x11c   : > { %1672 = vmatmul.mubr.bf16.gmra.mxu1 %v639_v25  ;;  %v617_v28 = vmax.f32 %v600_v26, 0.0  ;;  %1683 = vmatprep.subr.bf16.mxu0 %v2019_v1 }
 0x11d   : > { %v602_v29 = vpop.f32.mrf.mxu0  ;;  %1675 = vmatprep.mubr.msk.bf16.mxu1 %vm2020_vm0, %v2019_v1 }
 0x11e   : > { %v640_v31 = vpack.c.bf16 %v617_v28, %v617_v28 }
 0x11f   : > { %v1634_v30 = vpop.f32.mrf.mxu0  ;;  %1684 = vmatpush3.bf16.msra.mxu0 %v1839_v34 }
 0x120   : > { %1685 = vmatprep.subr.bf16.mxu0 %v2019_v1 }
 0x123   : > { %1686 = vmatpush3.bf16.msra.mxu0 %v1840_v35 }
 0x124   : > { %1676 = vmatmul.mubr.bf16.gmra.mxu1 %v640_v31  ;;  %1715 = vmatprep.subr.bf16.mxu0 %v2019_v1 }
 0x125   : > { %1735 = vmatprep.mubr.msk.bf16.mxu1 %vm2020_vm0, %v2019_v1 }
 0x1b4   : > { %v730_v37 = vpop.f32.mrf.mxu1 }
 0x1b5   : > { %v2291_v38 = vadd.f32 %v2288_v36, %v730_v37 }
 0x1b6   : > { %v1653_v39 = vpop.f32.mrf.mxu1 }
 0x1b7   : > { %784 = vst [vmem:[%s2295_s22] sm:$0xff] %v2291_v38  ;;  %v797_v40 = vmul.f32 0.5, %v2291_v38 }
 0x1b8   : > { %v733_v41 = vpop.f32.mrf.mxu1 }
 0x1b9   : > { %v810_v42 = vmul.f32 1.442695, %v797_v40  ;;  %v2301_v43 = vadd.f32 %v2288_v36, %v733_v41 }
 0x1ba   : > { %v1654_v44 = vpop.f32.mrf.mxu1 }
 0x1bb   : > { %1849 = vpow2.f32 %v810_v42  ;;  %785 = vst [vmem:[%s2295_s22 + $0x8] sm:$0xff] %v2301_v43  ;;  %v798_v45 = vmul.f32 0.5, %v2301_v43 }
 0x1bc   : > { %v738_v46 = vpop.f32.mrf.mxu1 }
 0x1bd   : > { %v812_v47 = vmul.f32 1.442695, %v798_v45  ;;  %v2307_v48 = vadd.f32 %v2288_v36, %v738_v46 }
 0x1be   : > { %v1657_v49 = vpop.f32.mrf.mxu1 }
 0x1bf   : > { %1851 = vpow2.f32 %v812_v47  ;;  %786 = vst [vmem:[%s2295_s22 + $0x10] sm:$0xff] %v2307_v48  ;;  %v799_v50 = vmul.f32 0.5, %v2307_v48 }
 0x1c0   : > { %v741_v51 = vpop.f32.mrf.mxu1 }
 0x1c1   : > { %v814_v52 = vmul.f32 1.442695, %v799_v50  ;;  %v2313_v53 = vadd.f32 %v2288_v36, %v741_v51 }
 0x1c2   : > { %v1658_v54 = vpop.f32.mrf.mxu1 }
 0x1c3   : > { %1853 = vpow2.f32 %v814_v52  ;;  %787 = vst [vmem:[%s2295_s22 + $0x18] sm:$0xff] %v2313_v53  ;;  %v800_v55 = vmul.f32 0.5, %v2313_v53 }
 0x1c4   : > { %v746_v56 = vpop.f32.mrf.mxu1 }
 0x1c5   : > { %v816_v57 = vmul.f32 1.442695, %v800_v55  ;;  %v2319_v58 = vadd.f32 %v2288_v36, %v746_v56 }
 0x1c6   : > { %v1661_v59 = vpop.f32.mrf.mxu1 }
 0x1c7   : > { %1855 = vpow2.f32 %v816_v57  ;;  %788 = vst [vmem:[%s2295_s22 + $0x20] sm:$0xff] %v2319_v58  ;;  %v801_v60 = vmul.f32 0.5, %v2319_v58  ;;  %v1841_v57 = vld [vmem:[%s2636_s8 + $0x38] sm:$0xff]  }
 0x1c8   : > { %v1850_v61 = vpop.eup %1849  ;;  %v749_v62 = vpop.f32.mrf.mxu1  ;;  %1767 = vmatpush3.bf16.msra.mxu1 %v1841_v57 }
 0x1c9   : > { %v818_v63 = vmul.f32 1.442695, %v801_v60  ;;  %v2325_v0 = vadd.f32 %v2288_v36, %v749_v62  ;;  %849 = vrot.lane.b32.xlu0 %v1850_v61, %s2021_s12  ;;  %1760 = vmatprep.subr.bf16.mxu1 %v2019_v1  ;;  %v1842_v60 = vld [vmem:[%s2636_s8 + $0x30] sm:$0xff]   ;;  %v1843_v61 = vld [vmem:[%s2636_s8 + $0x28] sm:$0xff]   ;;  %v1844_v62 = vld [vmem:[%s2636_s8 + $0x20] sm:$0xff]  }
 0x1ca   : > { %v1662_v2 = vpop.f32.mrf.mxu1 }
 0x1cb   : > { %1857 = vpow2.f32 %v818_v63  ;;  %789 = vst [vmem:[%s2295_s22 + $0x28] sm:$0xff] %v2325_v0  ;;  %v802_v3 = vmul.f32 0.5, %v2325_v0  ;;  %v1845_v63 = vld [vmem:[%s2636_s8 + $0x18] sm:$0xff]   ;;  %v1846_v2 = vld [vmem:[%s2636_s8 + $0x10] sm:$0xff]  }
 0x1cc   : > { %v1852_v4 = vpop.eup %1851  ;;  %v754_v5 = vpop.f32.mrf.mxu1  ;;  %1768 = vmatpush3.bf16.msra.mxu1 %v1842_v60 }
 0x1cd   : > { %v820_v6 = vmul.f32 1.442695, %v802_v3  ;;  %v2332_v7 = vadd.f32 %v2288_v36, %v754_v5  ;;  %851 = vrot.lane.b32.xlu0 %v1852_v4, %s2021_s12  ;;  %1761 = vmatprep.subr.bf16.mxu1 %v2019_v1  ;;  %v436_v3 = vld [vmem:[%s2414_s0] sm:$0xff]  ;;  %v437_v5 = vld [vmem:[%s2414_s0 + $0x8] sm:$0xff] }
 0x1ce   : > { %v1665_v8 = vpop.f32.mrf.mxu1 }
 0x1cf   : > { %1859 = vpow2.f32 %v820_v6  ;;  %790 = vst [vmem:[%s2295_s22 + $0x30] sm:$0xff] %v2332_v7  ;;  %v803_v9 = vmul.f32 0.5, %v2332_v7 }
 0x1d0   : > { %v1854_v10 = vpop.eup %1853  ;;  %v757_v11 = vpop.f32.mrf.mxu1  ;;  %1769 = vmatpush3.bf16.msra.mxu1 %v1843_v61 }
 0x1d1   : > { %v822_v12 = vmul.f32 1.442695, %v803_v9  ;;  %v2339_v13 = vadd.f32 %v2288_v36, %v757_v11  ;;  %853 = vrot.lane.b32.xlu1 %v1854_v10, %s2021_s12  ;;  %1762 = vmatprep.subr.bf16.mxu1 %v2019_v1 }
 0x1d2   : > { %v1666_v14 = vpop.f32.mrf.mxu1 }
 0x1d3   : > { %1861 = vpow2.f32 %v822_v12  ;;  %791 = vst [vmem:[%s2295_s22 + $0x38] sm:$0xff] %v2339_v13  ;;  %v804_v15 = vmul.f32 0.5, %v2339_v13  ;;  %v438_v12 = vld [vmem:[%s2414_s0 + $0x10] sm:$0xff] }
 0x1d4   : > { %v1856_v16 = vpop.eup %1855  ;;  %v762_v17 = vpop.f32.mrf.mxu1  ;;  %1770 = vmatpush3.bf16.msra.mxu1 %v1844_v62 }
 0x1d5   : > { %v824_v18 = vmul.f32 1.442695, %v804_v15  ;;  %v2346_v19 = vadd.f32 %v2288_v36, %v762_v17  ;;  %855 = vrot.lane.b32.xlu1 %v1856_v16, %s2021_s12  ;;  %1763 = vmatprep.subr.bf16.mxu1 %v2019_v1  ;;  %v439_v16 = vld [vmem:[%s2414_s0 + $0x18] sm:$0xff] }
 0x1d6   : > { %v1669_v20 = vpop.f32.mrf.mxu1 }
 0x1d7   : > { %1863 = vpow2.f32 %v824_v18  ;;  %792 = vst [vmem:[%s2295_s22 + $0x40] sm:$0xff] %v2346_v19  ;;  %v805_v21 = vmul.f32 0.5, %v2346_v19 }
 0x1d8   : > { %v1858_v22 = vpop.eup %1857  ;;  %v765_v23 = vpop.f32.mrf.mxu1  ;;  %1771 = vmatpush3.bf16.msra.mxu1 %v1845_v63 }
 0x1d9   : > { %v826_v24 = vmul.f32 1.442695, %v805_v21  ;;  %v2353_v25 = vadd.f32 %v2288_v36, %v765_v23  ;;  %857 = vrot.lane.b32.xlu0 %v1858_v22, %s2021_s12  ;;  %1764 = vmatprep.subr.bf16.mxu1 %v2019_v1  ;;  %v440_v21 = vld [vmem:[%s2414_s0 + $0x20] sm:$0xff] }
 0x1da   : > { %v1670_v26 = vpop.f32.mrf.mxu1 }
 0x1db   : > { %1865 = vpow2.f32 %v826_v24  ;;  %793 = vst [vmem:[%s2295_s22 + $0x48] sm:$0xff] %v2353_v25  ;;  %v806_v27 = vmul.f32 0.5, %v2353_v25  ;;  %v441_v24 = vld [vmem:[%s2414_s0 + $0x28] sm:$0xff] }
 0x1dc   : > { %v1860_v28 = vpop.eup %1859  ;;  %v770_v29 = vpop.f32.mrf.mxu1  ;;  %1772 = vmatpush3.bf16.msra.mxu1 %v1846_v2 }
 0x1dd   : > { %v828_v30 = vmul.f32 1.442695, %v806_v27  ;;  %v2360_v31 = vadd.f32 %v2288_v36, %v770_v29  ;;  %859 = vrot.lane.b32.xlu1 %v1860_v28, %s2021_s12  ;;  %1765 = vmatprep.subr.bf16.mxu1 %v2019_v1  ;;  %v442_v29 = vld [vmem:[%s2414_s0 + $0x30] sm:$0xff] }
 0x1de   : > { %v1673_v32 = vpop.f32.mrf.mxu1 }
 0x1df   : > { %1867 = vpow2.f32 %v828_v30  ;;  %794 = vst [vmem:[%s2295_s22 + $0x50] sm:$0xff] %v2360_v31  ;;  %v807_v33 = vmul.f32 0.5, %v2360_v31 }
 0x1e0   : > { %v1862_v34 = vpop.eup %1861  ;;  %v773_v35 = vpop.f32.mrf.mxu1 }
 0x1e1   : > { %v830_v37 = vmul.f32 1.442695, %v807_v33  ;;  %v2367_v39 = vadd.f32 %v2288_v36, %v773_v35  ;;  %861 = vrot.lane.b32.xlu0 %v1862_v34, %s2021_s12  ;;  %v443_v33 = vld [vmem:[%s2414_s0 + $0x38] sm:$0xff] }
 0x1e2   : > { %v1674_v40 = vpop.f32.mrf.mxu1 }
 0x1e3   : > { %1869 = vpow2.f32 %v830_v37  ;;  %795 = vst [vmem:[%s2295_s22 + $0x58] sm:$0xff] %v2367_v39  ;;  %v808_v41 = vmul.f32 0.5, %v2367_v39  ;;  %v444_v40 = vld [vmem:[%s2414_s0 + $0x40] sm:$0xff] }
 0x1e4   : > { %v1864_v42 = vpop.eup %1863  ;;  %v778_v44 = vpop.f32.mrf.mxu1 }
 0x1e5   : > { %v832_v45 = vmul.f32 1.442695, %v808_v41  ;;  %v2374_v46 = vadd.f32 %v2288_v36, %v778_v44  ;;  %863 = vrot.lane.b32.xlu1 %v1864_v42, %s2021_s12  ;;  %v445_v44 = vld [vmem:[%s2414_s0 + $0x48] sm:$0xff] }
 0x1e6   : > { %v1677_v47 = vpop.f32.mrf.mxu1 }
 0x1e7   : > { %1871 = vpow2.f32 %v832_v45  ;;  %796 = vst [vmem:[%s2295_s22 + $0x60] sm:$0xff] %v2374_v46  ;;  %v809_v49 = vmul.f32 0.5, %v2374_v46  ;;  %s1933_s22 = scalar_lea.vmem %s1932_s30, 3328 }
 0x1e8   : > { %v1866_v50 = vpop.eup %1865  ;;  %v781_v51 = vpop.f32.mrf.mxu1  ;;  %p1935_p1 = scmp.lt.s32.totalorder %s1933_s22, %s1927_s25 }
 0x1e9   : > { %v834_v52 = vmul.f32 1.442695, %v809_v49  ;;  %865 = vrot.lane.b32.xlu0 %v1866_v50, %s2021_s12  ;;  %v446_v50 = vld [vmem:[%s2414_s0 + $0x50] sm:$0xff] }
 0x1ea   : > { %v1678_v54 = vpop.f32.mrf.mxu1  ;;  %p1936_p2 = por %p1935_p1, %p1934_p0 }
 0x1eb   : > { %1873 = vpow2.f32 %v834_v52  ;;  %v447_v54 = vld [vmem:[%s2414_s0 + $0x58] sm:$0xff] }
 0x1ec   : > { %v1868_v55 = vpop.eup %1867  ;;  %p1937_p3 = pnand %p1936_p2, %p1930_p13 }
 0x1ed   : > { %867 = vrot.lane.b32.xlu1 %v1868_v55, %s2021_s12 }
 0x1f0   : > { %v1870_v36 = vpop.eup %1869 }
 0x1f1   : > { %869 = vrot.lane.b32.xlu0 %v1870_v36, %s2021_s12 }
 0x1f4   : > { %v1872_v56 = vpop.eup %1871 }
 0x1f5   : > { %871 = vrot.lane.b32.xlu1 %v1872_v56, %s2021_s12 }
 0x1f8   : > { %v1874_v59 = vpop.eup %1873 }
 0x1f9   : > { %873 = vrot.lane.b32.xlu0 %v1874_v59, %s2021_s12 }
 0x23b   : > { %v850_v4 = vpop.permute.xlu0 %849 }
 0x23c   : > { %v888_v6 = vmul.f32 %v850_v4, %v436_v3 }
 0x23e   : > { %v901_v10 = vadd.f32 %v888_v6, %v2291_v38 }
 0x23f   : > { %v852_v8 = vpop.permute.xlu0 %851 }
 0x240   : > { %v889_v9 = vmul.f32 %v852_v8, %v437_v5 }
 0x242   : > { %v902_v11 = vadd.f32 %v889_v9, %v2301_v43 }
 0x243   : > { %v854_v14 = vpop.permute.xlu1 %853 }
 0x244   : > { %v922_v15 = vpack.c.bf16 %v902_v11, %v901_v10  ;;  %v890_v17 = vmul.f32 %v854_v14, %v438_v12 }
 0x246   : > { %1688 = vmatmul.mubr.msk.bf16.vlgmr.msra.gmra.mxu0 %vm495_vm1, %v922_v15  ;;  %v903_v38 = vadd.f32 %v890_v17, %v2307_v48 }
 0x247   : > { %v856_v18 = vpop.permute.xlu1 %855  ;;  %1691 = vmatprep.mubr.msk.bf16.mxu0 %vm2020_vm0, %v2019_v1  ;;  %1716 = vmatpush3.bf16.msra.mxu0 %v1841_v57  ;;  %v448_v57 = vld [vmem:[%s2414_s0 + $0x60] sm:$0xff] }
 0x248   : > { %v891_v20 = vmul.f32 %v856_v18, %v439_v16  ;;  %1717 = vmatprep.subr.bf16.mxu0 %v2019_v1 }
 0x24a   : > { %v904_v43 = vadd.f32 %v891_v20, %v2313_v53 }
 0x24b   : > { %v858_v22 = vpop.permute.xlu0 %857  ;;  %1718 = vmatpush3.bf16.msra.mxu0 %v1842_v60 }
 0x24c   : > { %v923_v23 = vpack.c.bf16 %v904_v43, %v903_v38  ;;  %1719 = vmatprep.subr.bf16.mxu0 %v2019_v1  ;;  %v892_v26 = vmul.f32 %v858_v22, %v440_v21 }
 0x24e   : > { %1692 = vmatmul.mubr.msk.bf16.gmra.mxu0 %vm495_vm1, %v923_v23  ;;  %v905_v53 = vadd.f32 %v892_v26, %v2319_v58 }
 0x24f   : > { %v860_v27 = vpop.permute.xlu1 %859  ;;  %1695 = vmatprep.mubr.msk.bf16.mxu0 %vm2020_vm0, %v2019_v1  ;;  %1720 = vmatpush3.bf16.msra.mxu0 %v1843_v61 }
 0x250   : > { %v893_v48 = vmul.f32 %v860_v27, %v441_v24  ;;  %1721 = vmatprep.subr.bf16.mxu0 %v2019_v1 }
 0x252   : > { %v906_v28 = vadd.f32 %v893_v48, %v2325_v0 }
 0x253   : > { %v862_v30 = vpop.permute.xlu0 %861  ;;  %1722 = vmatpush3.bf16.msra.mxu0 %v1844_v62 }
 0x254   : > { %v924_v32 = vpack.c.bf16 %v906_v28, %v905_v53  ;;  %1723 = vmatprep.subr.bf16.mxu0 %v2019_v1  ;;  %v894_v34 = vmul.f32 %v862_v30, %v442_v29 }
 0x256   : > { %1696 = vmatmul.mubr.msk.bf16.gmra.mxu0 %vm495_vm1, %v924_v32  ;;  %v907_v0 = vadd.f32 %v894_v34, %v2332_v7 }
 0x257   : > { %v864_v35 = vpop.permute.xlu1 %863  ;;  %1699 = vmatprep.mubr.msk.bf16.mxu0 %vm2020_vm0, %v2019_v1  ;;  %1724 = vmatpush3.bf16.msra.mxu0 %v1845_v63 }
 0x258   : > { %v895_v58 = vmul.f32 %v864_v35, %v443_v33  ;;  %1725 = vmatprep.subr.bf16.mxu0 %v2019_v1 }
 0x25a   : > { %v908_v37 = vadd.f32 %v895_v58, %v2339_v13 }
 0x25b   : > { %v866_v41 = vpop.permute.xlu0 %865  ;;  %1726 = vmatpush3.bf16.msra.mxu0 %v1846_v2 }
 0x25c   : > { %v925_v42 = vpack.c.bf16 %v908_v37, %v907_v0  ;;  %1727 = vmatprep.subr.bf16.mxu0 %v2019_v1  ;;  %v896_v45 = vmul.f32 %v866_v41, %v444_v40 }
 0x25e   : > { %1700 = vmatmul.mubr.msk.bf16.gmra.mxu0 %vm495_vm1, %v925_v42  ;;  %v909_v7 = vadd.f32 %v896_v45, %v2346_v19 }
 0x25f   : > { %v868_v47 = vpop.permute.xlu1 %867  ;;  %1703 = vmatprep.mubr.msk.bf16.mxu0 %vm2020_vm0, %v2019_v1 }
 0x260   : > { %v897_v49 = vmul.f32 %v868_v47, %v445_v44 }
 0x262   : > { %v910_v13 = vadd.f32 %v897_v49, %v2353_v25 }
 0x263   : > { %v870_v51 = vpop.permute.xlu0 %869 }
 0x264   : > { %v926_v52 = vpack.c.bf16 %v910_v13, %v909_v7  ;;  %v898_v55 = vmul.f32 %v870_v51, %v446_v50 }
 0x266   : > { %1704 = vmatmul.mubr.msk.bf16.gmra.mxu0 %vm495_vm1, %v926_v52  ;;  %v911_v59 = vadd.f32 %v898_v55, %v2360_v31  ;;  %v1847_v31 = vld [vmem:[%s2636_s8 + $0x8] sm:$0xff]  }
 0x267   : > { %v872_v36 = vpop.permute.xlu1 %871  ;;  %1707 = vmatprep.mubr.msk.bf16.mxu0 %vm2020_vm0, %v2019_v1  ;;  %1728 = vmatpush3.bf16.msra.mxu0 %v1847_v31 }
 0x268   : > { %v899_v56 = vmul.f32 %v872_v36, %v447_v54  ;;  %1773 = vmatpush3.bf16.msra.mxu1 %v1847_v31  ;;  %1729 = vmatprep.subr.bf16.mxu0 %v2019_v1 }
 0x269   : > { %1766 = vmatprep.subr.bf16.mxu1 %v2019_v1 }
 0x26a   : > { %v912_v60 = vadd.f32 %v899_v56, %v2367_v39  ;;  %v1848_v39 = vld [vmem:[%s2636_s8] sm:$0xff]  }
 0x26b   : > { %v874_v19 = vpop.permute.xlu0 %873  ;;  %1730 = vmatpush3.bf16.msra.mxu0 %v1848_v39 }
 0x26c   : > { %v927_v61 = vpack.c.bf16 %v912_v60, %v911_v59  ;;  %v900_v25 = vmul.f32 %v874_v19, %v448_v57  ;;  %1774 = vmatpush3.bf16.msra.mxu1 %v1848_v39 }
 0x26e   : > { %1708 = vmatmul.mubr.msk.bf16.gmra.mxu0 %vm495_vm1, %v927_v61  ;;  %v913_v62 = vadd.f32 %v900_v25, %v2374_v46  ;;  %v2480_v46 = vld [vmem:[%s2635_s7] ss:$0 sm:$0xff] }
 0x26f   : > { %1711 = vmatprep.mubr.msk.bf16.mxu0 %vm2020_vm0, %v2019_v1 }
 0x270   : > { %v928_v63 = vpack.c.bf16 %v913_v62, %v913_v62 }
 0x276   : > { %1712 = vmatmul.mubr.msk.bf16.gmra.mxu0 %vm495_vm1, %v928_v63 }
 0x277   : > { %1731 = vmatprep.mubr.msk.bf16.mxu0 %vm2020_vm0, %v2019_v1 }
 0x306   : > { %v1015_v2 = vpop.f32.mrf.mxu0 }
 0x307   : > { %v1016_v4 = vadd.f32 %v2480_v46, %v1015_v2 }
 0x308   : > { %v1689_v3 = vpop.f32.mrf.mxu0 }
 0x309   : > { %v1069_v9 = vmax.f32 %v1016_v4, 0.0 }
 0x30a   : > { %v1018_v5 = vpop.f32.mrf.mxu0 }
 0x30b   : > { %v1019_v6 = vadd.f32 %v2480_v46, %v1018_v5 }
 0x30c   : > { %v1690_v8 = vpop.f32.mrf.mxu0 }
 0x30d   : > { %v1070_v10 = vmax.f32 %v1019_v6, 0.0 }
 0x30e   : > { %v1023_v11 = vpop.f32.mrf.mxu0 }
 0x30f   : > { %v1098_v12 = vpack.c.bf16 %v1070_v10, %v1069_v9  ;;  %v1024_v15 = vadd.f32 %v2480_v46, %v1023_v11 }
 0x310   : > { %v1693_v14 = vpop.f32.mrf.mxu0 }
 0x311   : > { %1732 = vmatmul.mubr.bf16.vlgmr.msra.gmra.mxu0 %v1098_v12  ;;  %v1071_v20 = vmax.f32 %v1024_v15, 0.0 }
 0x312   : > { %v1026_v16 = vpop.f32.mrf.mxu0 }
 0x313   : > { %v1027_v17 = vadd.f32 %v2480_v46, %v1026_v16 }
 0x314   : > { %v1694_v18 = vpop.f32.mrf.mxu0 }
 0x315   : > { %v1072_v38 = vmax.f32 %v1027_v17, 0.0 }
 0x316   : > { %v1031_v43 = vpop.f32.mrf.mxu0 }
 0x317   : > { %v1099_v21 = vpack.c.bf16 %v1072_v38, %v1071_v20  ;;  %v1032_v23 = vadd.f32 %v2480_v46, %v1031_v43 }
 0x318   : > { %v1697_v22 = vpop.f32.mrf.mxu0 }
 0x319   : > { %1736 = vmatmul.mubr.bf16.vlgmr.msra.gmra.mxu1 %v1099_v21  ;;  %v1073_v48 = vmax.f32 %v1032_v23, 0.0 }
 0x31a   : > { %v1034_v24 = vpop.f32.mrf.mxu0  ;;  %1739 = vmatprep.mubr.msk.bf16.mxu1 %vm2020_vm0, %v2019_v1 }
 0x31b   : > { %v1035_v26 = vadd.f32 %v2480_v46, %v1034_v24 }
 0x31c   : > { %v1698_v27 = vpop.f32.mrf.mxu0 }
 0x31d   : > { %v1074_v53 = vmax.f32 %v1035_v26, 0.0 }
 0x31e   : > { %v1039_v28 = vpop.f32.mrf.mxu0 }
 0x31f   : > { %v1100_v29 = vpack.c.bf16 %v1074_v53, %v1073_v48  ;;  %v1040_v32 = vadd.f32 %v2480_v46, %v1039_v28 }
 0x320   : > { %v1701_v30 = vpop.f32.mrf.mxu0 }
 0x321   : > { %1740 = vmatmul.mubr.bf16.gmra.mxu1 %v1100_v29  ;;  %v1075_v58 = vmax.f32 %v1040_v32, 0.0 }
 0x322   : > { %v1042_v33 = vpop.f32.mrf.mxu0  ;;  %1743 = vmatprep.mubr.msk.bf16.mxu1 %vm2020_vm0, %v2019_v1 }
 0x323   : > { %v1043_v34 = vadd.f32 %v2480_v46, %v1042_v33 }
 0x324   : > { %v1702_v35 = vpop.f32.mrf.mxu0 }
 0x325   : > { %v1076_v0 = vmax.f32 %v1043_v34, 0.0 }
 0x326   : > { %v1047_v37 = vpop.f32.mrf.mxu0 }
 0x327   : > { %v1101_v40 = vpack.c.bf16 %v1076_v0, %v1075_v58  ;;  %v1048_v42 = vadd.f32 %v2480_v46, %v1047_v37 }
 0x328   : > { %v1705_v41 = vpop.f32.mrf.mxu0 }
 0x329   : > { %1744 = vmatmul.mubr.bf16.gmra.mxu1 %v1101_v40  ;;  %v1077_v49 = vmax.f32 %v1048_v42, 0.0 }
 0x32a   : > { %v1050_v44 = vpop.f32.mrf.mxu0  ;;  %1747 = vmatprep.mubr.msk.bf16.mxu1 %vm2020_vm0, %v2019_v1 }
 0x32b   : > { %v1051_v45 = vadd.f32 %v2480_v46, %v1050_v44 }
 0x32c   : > { %v1706_v47 = vpop.f32.mrf.mxu0 }
 0x32d   : > { %v1078_v7 = vmax.f32 %v1051_v45, 0.0 }
 0x32e   : > { %v1055_v13 = vpop.f32.mrf.mxu0 }
 0x32f   : > { %v1102_v50 = vpack.c.bf16 %v1078_v7, %v1077_v49  ;;  %v1056_v52 = vadd.f32 %v2480_v46, %v1055_v13 }
 0x330   : > { %v1709_v51 = vpop.f32.mrf.mxu0 }
 0x331   : > { %1748 = vmatmul.mubr.bf16.gmra.mxu1 %v1102_v50  ;;  %v1079_v56 = vmax.f32 %v1056_v52, 0.0 }
 0x332   : > { %v1058_v54 = vpop.f32.mrf.mxu0  ;;  %1751 = vmatprep.mubr.msk.bf16.mxu1 %vm2020_vm0, %v2019_v1 }
 0x333   : > { %v1059_v55 = vadd.f32 %v2480_v46, %v1058_v54 }
 0x334   : > { %v1710_v36 = vpop.f32.mrf.mxu0 }
 0x335   : > { %v1080_v57 = vmax.f32 %v1059_v55, 0.0 }
 0x336   : > { %v1063_v59 = vpop.f32.mrf.mxu0 }
 0x337   : > { %v1103_v60 = vpack.c.bf16 %v1080_v57, %v1079_v56  ;;  %v1064_v19 = vadd.f32 %v2480_v46, %v1063_v59 }
 0x338   : > { %v1713_v61 = vpop.f32.mrf.mxu0 }
 0x339   : > { %1752 = vmatmul.mubr.bf16.gmra.mxu1 %v1103_v60  ;;  %v1081_v62 = vmax.f32 %v1064_v19, 0.0 }
 0x33a   : > { %v1066_v25 = vpop.f32.mrf.mxu0  ;;  %1755 = vmatprep.mubr.msk.bf16.mxu1 %vm2020_vm0, %v2019_v1 }
 0x33b   : > { %v1104_v31 = vpack.c.bf16 %v1081_v62, %v1081_v62 }
 0x33c   : > { %v1714_v63 = vpop.f32.mrf.mxu0 }
 0x341   : > { %1756 = vmatmul.mubr.bf16.gmra.mxu1 %v1104_v31 }
 0x342   : > { %1940 = shalt.err (!%p1937_p3)
}
 0x343   : > { %s1941_s15 = scalar_lea.hbm %s2512_s14, 1664  ;;  %s1945_s29 = scalar_lea.hbm %s2639_s11, 3328 }
 0x344   : > { %p1942_p4 = scmp.ne.s32.totalorder %s2512_s14, %s1941_s15  ;;  %p1946_p9 = scmp.lt.s32.totalorder %s2512_s14, %s2639_s11 }
 0x345   : > { %p1947_p10 = scmp.lt.s32.totalorder %s1945_s29, %s1941_s15 }
 0x346   : > { %p1943_p7 = pnand %p1942_p4, %p2124_p5 }
 0x347   : > { %p1948_p11 = por %p1947_p10, %p1946_p9 }
 0x348   : > { %p1944_p8 = pneg %p1943_p7 }
 0x34a   : > { %p1949_p12 = pnand %p1948_p11, %p1944_p8 }
 0x34c   : > { %1952 = shalt.err (!%p1949_p12)
}
 0x34d   : > { %s2643_s25 = smov 128   ;;  %s2024_s30 = smov 8   ;;  %v2545_v1 = vld [vmem:[%s2637_s9] ss:$0 sm:$0xff] }
 0x34e   : > { %s2651_s24 = scalar_lea.sflag [#allocation5], %s2282_s16  ;;  %s2652_s1 = smul.u32 104, %s2282_s16 }
 0x34f   : > { %1777 = dma.vmem_to_hbm [thread:$0]  (%p2124_p5), %s2514_s13, 1664, %s2512_s14, %s2651_s24, %s2643_s25, %s2643_s25, %s2024_s30  }
 0x350   : > { %s2558_s13 = scalar_lea.vmem [#allocation2], %s2652_s1  ;;  %s2653_s12 = smul.u32 1664, %s2107_s21 }
 0x351   : > { %s1358_s14 = sshll.u32 %s2558_s13, 4  ;;  %s1340_s22 = scalar_lea.sflag [#allocation3], %s2282_s16  ;;  %s2584_s14 = int_to_ptr.vmem [resolvable:$true] %s1358_s14 }
 0x352   : > { %s2582_s24 = scalar_lea.hbm %s2638_s10, %s2653_s12  ;;  %s1953_s0 = scalar_lea.vmem %s2584_s14, 1664 }
 0x353   : > { %p1954_p13 = scmp.ne.s32.totalorder %s2584_s14, %s1953_s0  ;;  %s2025_s1 = smov [#allocation2]  }
 0x354   : > { %s1957_s21 = sshll.u32 %s2025_s1, 4  ;;  %s1958_s21 = int_to_ptr.vmem [resolvable:$false] %s1957_s21 }
 0x355   : > { %p1955_p0 = pnand %p1954_p13, %p2124_p5  ;;  %s1959_s25 = scalar_lea.vmem %s1958_s21, 3328 }
 0x356   : > { %p1960_p2 = scmp.lt.s32.totalorder %s2584_s14, %s1958_s21  ;;  %p1961_p3 = scmp.lt.s32.totalorder %s1959_s25, %s1953_s0 }
 0x357   : > { %p1956_p1 = pneg %p1955_p0 }
 0x358   : > { %p1962_p4 = por %p1961_p3, %p1960_p2 }
 0x35a   : > { %p1963_p7 = pnand %p1962_p4, %p1956_p1 }
 0x3d1   : > { %v1194_v39 = vpop.f32.mrf.mxu0 }
 0x3d2   : > { %v1195_v46 = vadd.f32 %v2545_v1, %v1194_v39 }
 0x3d3   : > { %v1733_v2 = vpop.f32.mrf.mxu0 }
 0x3d4   : > { %v1528_v3 = vmul.f32 -1.442695, %v1195_v46 }
 0x3d5   : > { %v1197_v4 = vpop.f32.mrf.mxu0 }
 0x3d6   : > { %1875 = vpow2.f32 %v1528_v3  ;;  %v1198_v5 = vadd.f32 %v2545_v1, %v1197_v4 }
 0x3d7   : > { %v1734_v6 = vpop.f32.mrf.mxu0 }
 0x3d8   : > { %v1529_v8 = vmul.f32 -1.442695, %v1198_v5 }
 0x3d9   : > { %v1202_v9 = vpop.f32.mrf.mxu1 }
 0x3da   : > { %1877 = vpow2.f32 %v1529_v8  ;;  %v1203_v10 = vadd.f32 %v2545_v1, %v1202_v9 }
 0x3db   : > { %v1737_v11 = vpop.f32.mrf.mxu1 }
 0x3dc   : > { %v1530_v12 = vmul.f32 -1.442695, %v1203_v10 }
 0x3dd   : > { %v1205_v14 = vpop.f32.mrf.mxu1 }
 0x3de   : > { %1879 = vpow2.f32 %v1530_v12  ;;  %v1206_v15 = vadd.f32 %v2545_v1, %v1205_v14 }
 0x3df   : > { %v1738_v16 = vpop.f32.mrf.mxu1 }
 0x3e0   : > { %v1531_v17 = vmul.f32 -1.442695, %v1206_v15 }
 0x3e1   : > { %v1210_v18 = vpop.f32.mrf.mxu1 }
 0x3e2   : > { %1881 = vpow2.f32 %v1531_v17  ;;  %v1211_v20 = vadd.f32 %v2545_v1, %v1210_v18 }
 0x3e3   : > { %v1876_v38 = vpop.eup %1875  ;;  %v1741_v43 = vpop.f32.mrf.mxu1 }
 0x3e4   : > { %v1287_v21 = vadd.f32 1.0, %v1876_v38  ;;  %v1532_v22 = vmul.f32 -1.442695, %v1211_v20 }
 0x3e5   : > { %v1213_v23 = vpop.f32.mrf.mxu1 }
 0x3e6   : > { %1883 = vrcp.f32 %v1287_v21  ;;  %v1214_v24 = vadd.f32 %v2545_v1, %v1213_v23 }
 0x3e7   : > { %v1878_v26 = vpop.eup %1877  ;;  %1885 = vpow2.f32 %v1532_v22  ;;  %v1742_v27 = vpop.f32.mrf.mxu1 }
 0x3e8   : > { %v1288_v48 = vadd.f32 1.0, %v1878_v26  ;;  %v1533_v53 = vmul.f32 -1.442695, %v1214_v24 }
 0x3e9   : > { %v1218_v28 = vpop.f32.mrf.mxu1 }
 0x3ea   : > { %1887 = vrcp.f32 %v1288_v48  ;;  %v1219_v29 = vadd.f32 %v2545_v1, %v1218_v28 }
 0x3eb   : > { %v1880_v30 = vpop.eup %1879  ;;  %1889 = vpow2.f32 %v1533_v53  ;;  %v1745_v32 = vpop.f32.mrf.mxu1 }
 0x3ec   : > { %v1289_v33 = vadd.f32 1.0, %v1880_v30  ;;  %v1534_v34 = vmul.f32 -1.442695, %v1219_v29 }
 0x3ed   : > { %v1221_v35 = vpop.f32.mrf.mxu1 }
 0x3ee   : > { %1891 = vrcp.f32 %v1289_v33  ;;  %v1222_v58 = vadd.f32 %v2545_v1, %v1221_v35 }
 0x3ef   : > { %v1882_v0 = vpop.eup %1881  ;;  %1893 = vpow2.f32 %v1534_v34  ;;  %v1746_v37 = vpop.f32.mrf.mxu1 }
 0x3f0   : > { %v1290_v40 = vadd.f32 1.0, %v1882_v0  ;;  %v1535_v41 = vmul.f32 -1.442695, %v1222_v58 }
 0x3f1   : > { %v1226_v42 = vpop.f32.mrf.mxu1 }
 0x3f2   : > { %1895 = vrcp.f32 %v1290_v40  ;;  %v1227_v44 = vadd.f32 %v2545_v1, %v1226_v42 }
 0x3f3   : > { %v1884_v45 = vpop.eup %1883  ;;  %1897 = vpow2.f32 %v1535_v41  ;;  %v1749_v47 = vpop.f32.mrf.mxu1 }
 0x3f4   : > { %v1886_v49 = vpop.eup %1885  ;;  %1326 = vst [vmem:[%s2558_s13] sm:$0xff] %v1884_v45  ;;  %v1536_v7 = vmul.f32 -1.442695, %v1227_v44 }
 0x3f5   : > { %v1291_v13 = vadd.f32 1.0, %v1886_v49  ;;  %v1229_v50 = vpop.f32.mrf.mxu1 }
 0x3f6   : > { %1899 = vpow2.f32 %v1536_v7  ;;  %v1230_v51 = vadd.f32 %v2545_v1, %v1229_v50 }
 0x3f7   : > { %v1888_v52 = vpop.eup %1887  ;;  %1901 = vrcp.f32 %v1291_v13  ;;  %v1750_v54 = vpop.f32.mrf.mxu1 }
 0x3f8   : > { %v1890_v55 = vpop.eup %1889  ;;  %1327 = vst [vmem:[%s2558_s13 + $0x8] sm:$0xff] %v1888_v52  ;;  %v1537_v36 = vmul.f32 -1.442695, %v1230_v51 }
 0x3f9   : > { %v1292_v56 = vadd.f32 1.0, %v1890_v55  ;;  %v1234_v57 = vpop.f32.mrf.mxu1 }
 0x3fa   : > { %1903 = vpow2.f32 %v1537_v36  ;;  %v1235_v59 = vadd.f32 %v2545_v1, %v1234_v57 }
 0x3fb   : > { %v1892_v60 = vpop.eup %1891  ;;  %1905 = vrcp.f32 %v1292_v56  ;;  %v1753_v19 = vpop.f32.mrf.mxu1 }
 0x3fc   : > { %v1894_v61 = vpop.eup %1893  ;;  %1328 = vst [vmem:[%s2558_s13 + $0x10] sm:$0xff] %v1892_v60  ;;  %v1538_v25 = vmul.f32 -1.442695, %v1235_v59 }
 0x3fd   : > { %v1293_v62 = vadd.f32 1.0, %v1894_v61  ;;  %v1237_v63 = vpop.f32.mrf.mxu1 }
 0x3fe   : > { %1907 = vpow2.f32 %v1538_v25  ;;  %v1238_v31 = vadd.f32 %v2545_v1, %v1237_v63 }
 0x3ff   : > { %v1896_v39 = vpop.eup %1895  ;;  %1909 = vrcp.f32 %v1293_v62  ;;  %v1754_v46 = vpop.f32.mrf.mxu1 }
 0x400   : > { %v1898_v2 = vpop.eup %1897  ;;  %1329 = vst [vmem:[%s2558_s13 + $0x18] sm:$0xff] %v1896_v39  ;;  %v1539_v3 = vmul.f32 -1.442695, %v1238_v31 }
 0x401   : > { %v1294_v4 = vadd.f32 1.0, %v1898_v2  ;;  %v1242_v5 = vpop.f32.mrf.mxu1 }
 0x402   : > { %1911 = vpow2.f32 %v1539_v3  ;;  %v1243_v6 = vadd.f32 %v2545_v1, %v1242_v5 }
 0x403   : > { %v1900_v8 = vpop.eup %1899  ;;  %1913 = vrcp.f32 %v1294_v4  ;;  %v1757_v9 = vpop.f32.mrf.mxu1 }
 0x404   : > { %v1902_v10 = vpop.eup %1901  ;;  %v1295_v11 = vadd.f32 1.0, %v1900_v8  ;;  %v1540_v12 = vmul.f32 -1.442695, %v1243_v6 }
 0x405   : > { %1330 = vst [vmem:[%s2558_s13 + $0x20] sm:$0xff] %v1902_v10  ;;  %v1245_v14 = vpop.f32.mrf.mxu1 }
 0x406   : > { %1915 = vrcp.f32 %v1295_v11 }
 0x407   : > { %v1904_v15 = vpop.eup %1903  ;;  %1917 = vpow2.f32 %v1540_v12  ;;  %v1758_v16 = vpop.f32.mrf.mxu1 }
 0x408   : > { %v1906_v17 = vpop.eup %1905  ;;  %v1296_v18 = vadd.f32 1.0, %v1904_v15 }
 0x409   : > { %1331 = vst [vmem:[%s2558_s13 + $0x28] sm:$0xff] %v1906_v17 }
 0x40a   : > { %1919 = vrcp.f32 %v1296_v18 }
 0x40b   : > { %v1908_v1 = vpop.eup %1907 }
 0x40c   : > { %v1910_v20 = vpop.eup %1909  ;;  %v1297_v38 = vadd.f32 1.0, %v1908_v1 }
 0x40d   : > { %1332 = vst [vmem:[%s2558_s13 + $0x30] sm:$0xff] %v1910_v20 }
 0x40e   : > { %1921 = vrcp.f32 %v1297_v38 }
 0x40f   : > { %v1912_v43 = vpop.eup %1911 }
 0x410   : > { %v1914_v21 = vpop.eup %1913  ;;  %v1298_v22 = vadd.f32 1.0, %v1912_v43 }
 0x411   : > { %1333 = vst [vmem:[%s2558_s13 + $0x38] sm:$0xff] %v1914_v21 }
 0x412   : > { %1923 = vrcp.f32 %v1298_v22 }
 0x413   : > { %v1916_v23 = vpop.eup %1915 }
 0x414   : > { %v1918_v24 = vpop.eup %1917  ;;  %1334 = vst [vmem:[%s2558_s13 + $0x40] sm:$0xff] %v1916_v23 }
 0x415   : > { %v1299_v26 = vadd.f32 1.0, %v1918_v24 }
 0x417   : > { %v1920_v27 = vpop.eup %1919  ;;  %1925 = vrcp.f32 %v1299_v26 }
 0x418   : > { %1335 = vst [vmem:[%s2558_s13 + $0x48] sm:$0xff] %v1920_v27 }
 0x41b   : > { %v1922_v48 = vpop.eup %1921 }
 0x41c   : > { %1336 = vst [vmem:[%s2558_s13 + $0x50] sm:$0xff] %v1922_v48 }
 0x41f   : > { %v1924_v53 = vpop.eup %1923 }
 0x420   : > { %1337 = vst [vmem:[%s2558_s13 + $0x58] sm:$0xff] %v1924_v53 }
 0x424   : > { %v1926_v28 = vpop.eup %1925 }
 0x425   : > { %1338 = vst [vmem:[%s2558_s13 + $0x60] sm:$0xff] %v1926_v28 }
 0x426   : > { %1966 = shalt.err (!%p1963_p7)
}
 0x427   : > { %s1967_s13 = scalar_lea.hbm %s2582_s24, 1664  ;;  %s1971_s15 = scalar_lea.hbm %s2638_s10, 3328 }
 0x428   : > { %p1968_p8 = scmp.ne.s32.totalorder %s2582_s24, %s1967_s13  ;;  %p1972_p11 = scmp.lt.s32.totalorder %s2582_s24, %s2638_s10 }
 0x429   : > { %p1973_p12 = scmp.lt.s32.totalorder %s1971_s15, %s1967_s13 }
 0x42a   : > { %p1969_p9 = pnand %p1968_p8, %p2124_p5 }
 0x42b   : > { %p1974_p13 = por %p1973_p12, %p1972_p11 }
 0x42c   : > { %p1970_p10 = pneg %p1969_p9 }
 0x42e   : > { %p1975_p0 = pnand %p1974_p13, %p1970_p10 }
 0x430   : > { %1978 = shalt.err (!%p1975_p0)
}
 0x431   : > { %s2654_s25 = smov 128  }
 0x432   : > { %1776 = dma.vmem_to_hbm [thread:$0]  (%p2124_p5), %s2584_s14, 1664, %s2582_s24, %s1340_s22, %s2654_s25, %s2654_s25, %s2024_s30  }
 0x433 PF: > { %p1787_p1 = scmp.ge.s32.totalorder %s2017_s20, 2  ;;  %s1389_s0 = sand.u32 1, %s2005_s17  }
 0x434   : > { %s1390_s21 = scalar_lea.sflag [#allocation3], %s1389_s0 }
 0x435   : > { %p1781_p2 = pnand %p1787_p1, %p2128_p6 }
 0x437   : > { %p1782_p3 = pneg %p1781_p2 }
 0x439   : > { %1996 = dma.done.wait (%p1782_p3), %s1390_s21, 1664  }
 0x43a   : > { %1998 = vsyncadd (%p1782_p3), %s1390_s21, 4294965632  ;;  %s1399_s13 = scalar_lea.sflag [#allocation5], %s1389_s0 }
 0x43b   : > { %2000 = dma.done.wait (%p1782_p3), %s1399_s13, 1664  }
 0x43c   : > { %2002 = vsyncadd (%p1782_p3), %s1399_s13, 4294965632  ;;  %p25_p5 = scmp.ge.s32.totalorder %s2111_s23, 4   ;;  %s2655_s17 = smov %s2009_s18 }
 0x43d   : > { %s2656_s18 = smov %s2013_s19  ;;  %s2657_s19 = smov %s2122_s26 }
 0x43e   : > { %s2658_s20 = smov %s2111_s23  ;;  %27 = sbr.rel (!%p25_p5) target bundleno = 8 (0x8), region = 115 }
 0x443   :  { %1404 = vsyncpa [#allocation3], 1 }
 0x444   :  { %1406 = vsyncpa [#allocation3 + $0x1], 1 }
 0x445   :  { %1407 = vsyncpa [#allocation5], 1 }
 0x446   :  { %1409 = vsyncpa [#allocation5 + $0x1], 1 }

</bundles_post_ra>
